<compile_context>
chip_gen: v7x
topology: tpu7x:2x2x1
jax: 0.10.0
libtpu: 0.0.40
codegen_flags: <defaults>
</compile_context>

<pallas_src>
import jax
import jax.numpy as jnp
from jax.experimental import pallas as pl
from jax.experimental.pallas import tpu as pltpu

KERNEL_SIZE = 7
PAD = KERNEL_SIZE // 2


def spatial_attention_kernel(w_ref, b_ref, x_ref, o_ref):
    # w_ref: SMEM (2, K) f32    b_ref: SMEM (1,) f32
    # x_ref / o_ref: VMEM (TB, C, Lp)  (C -> sublanes, Lp -> lanes)
    x = x_ref[...]                                         # input dtype
    TB, _C, Lp = x.shape

    # Channel pooling with f32 accumulation (no full-tile f32 temporary);
    # pooled rows stay dense as (TB, Lp): TB packs into sublanes.
    avg = jnp.mean(x, axis=1, dtype=jnp.float32)           # (TB, Lp) f32
    mx = jnp.max(x, axis=1).astype(jnp.float32)            # (TB, Lp) f32

    # "same" Conv1d(2 -> 1, k=7, pad=3) with zero padding, unrolled over taps.
    # One TB-independent validity mask per tap, shared by both pooled channels.
    pos = jax.lax.broadcasted_iota(jnp.int32, (1, Lp), 1)  # (1, Lp)
    acc = jnp.full((TB, Lp), b_ref[0], dtype=jnp.float32)
    for k in range(KERNEL_SIZE):
        off = k - PAD                                      # static tap offset
        sh_avg = pltpu.roll(avg, shift=(-off) % Lp, axis=1)  # [l] = avg[l+off]
        sh_max = pltpu.roll(mx, shift=(-off) % Lp, axis=1)
        tap = w_ref[0, k] * sh_avg + w_ref[1, k] * sh_max
        if off < 0:
            tap = jnp.where(pos >= -off, tap, 0.0)
        elif off > 0:
            tap = jnp.where(pos < Lp - off, tap, 0.0)
        acc = acc + tap

    att = jax.nn.sigmoid(acc).astype(o_ref.dtype)          # (TB, Lp)
    # Final broadcast-multiply straight from the ref, in the input dtype.
    o_ref[...] = (x_ref[...] * att[:, None, :]).astype(o_ref.dtype)


def _chip_tiling_defaults():
    """Returns (block_bytes, min_grid_steps, vmem_capacity_bytes)."""
    vmem_cap = 128 * 1024 * 1024
    try:
        info = pltpu.get_tpu_info()
        vmem_cap = int(getattr(info, "vmem_capacity_bytes", vmem_cap))
    except Exception:
        pass
    if vmem_cap <= 64 * 1024 * 1024:
        # v7x-class: 64 MiB VMEM, 2 TensorCores -> smaller blocks, >=4 steps
        # so each core still double-buffers.
        return 4 * 1024 * 1024, 4, vmem_cap
    # v5e / v6e: 128 MiB VMEM, 1 TensorCore.
    return 8 * 1024 * 1024, 2, vmem_cap


def spatial_attention(x, weight, bias, *, block_bytes=None):
    """x: (B, C, L), weight: (1, 2, K) f32, bias: (1,) f32."""
    B, C, L = x.shape
    out_dtype = x.dtype

    default_block_bytes, min_steps, vmem_cap = _chip_tiling_defaults()
    if block_bytes is None:
        block_bytes = default_block_bytes

    # Pad L to a lane multiple (unmasked lane-dense vst); padded columns are
    # zero, which pools to zero and matches the conv's zero padding exactly.
    Lp = ((L + 127) // 128) * 128
    if Lp != L:
        x = jnp.pad(x, ((0, 0), (0, 0), (0, Lp - L)))

    itemsize = jnp.dtype(x.dtype).itemsize
    per_batch_bytes = C * Lp * itemsize

    # Keep the block budget consistent with the chip's VMEM (in + out blocks
    # are double-buffered -> 4x block bytes, plus headroom for pooled rows and
    # Mosaic scratch).
    headroom = 8 * 1024 * 1024
    max_block_bytes = max(1, (int(0.9 * vmem_cap) - headroom) // 4)
    block_bytes = min(block_bytes, max_block_bytes)
    assert per_batch_bytes <= max_block_bytes, (
        f"single batch row ({per_batch_bytes} B) too large for VMEM "
        f"({vmem_cap} B)")
    # TODO(synk): add an L-tiled (3-column halo) path for rows larger than VMEM.

    # Batch-block: biggest TB within the per-block byte budget while keeping at
    # least `min_steps` grid steps (pipelining; v7x megacore) when B allows.
    tb_cap = max(1, block_bytes // per_batch_bytes)
    tb_cap = min(tb_cap, max(1, B // min_steps))
    TB = int(max(1, min(tb_cap, B)))
    num_blocks = pl.cdiv(B, TB)              # TB need not divide B
    block_actual = TB * per_batch_bytes
    vmem_limit = int(4 * block_actual + headroom)

    w2 = weight[0].astype(jnp.float32)                 # (2, K)
    b1 = bias.reshape((1,)).astype(jnp.float32)        # (1,)

    cost = pl.CostEstimate(
        flops=(2 * C + 2) * B * Lp + 4 * KERNEL_SIZE * B * Lp,
        transcendentals=B * Lp,                        # sigmoid
        bytes_accessed=2 * B * C * Lp * itemsize,
    )

    out = pl.pallas_call(
        spatial_attention_kernel,
        out_shape=jax.ShapeDtypeStruct((B, C, Lp), out_dtype),
        grid_spec=pltpu.PrefetchScalarGridSpec(
            num_scalar_prefetch=0,
            grid=(num_blocks,),
            in_specs=[
                pl.BlockSpec(memory_space=pltpu.MemorySpace.SMEM),  # weight (2, K)
                pl.BlockSpec(memory_space=pltpu.MemorySpace.SMEM),  # bias (1,)
                pl.BlockSpec((TB, C, Lp), lambda b: (b, 0, 0)),     # x tile
            ],
            out_specs=pl.BlockSpec((TB, C, Lp), lambda b: (b, 0, 0)),
        ),
        compiler_params=pltpu.CompilerParams(
            dimension_semantics=("parallel",),
            vmem_limit_bytes=vmem_limit,
        ),
        cost_estimate=cost,
    )(w2, b1, x)

    if Lp != L:
        out = out[:, :, :L]
    return out


def spatial_attention_ref(x, weight, bias):
    avg_out = jnp.mean(x, axis=1, keepdims=True)
    max_out = jnp.max(x, axis=1, keepdims=True)
    att_in = jnp.concatenate([avg_out, max_out], axis=1)   # (B, 2, L)
    conv = jax.lax.conv_general_dilated(
        att_in, weight, window_strides=(1,), padding=((PAD, PAD),),
        dimension_numbers=("NCH", "OIH", "NCH"))
    att = jax.nn.sigmoid(conv + bias.reshape(1, 1, 1))
    return x * att


if __name__ == "__main__":
    key = jax.random.PRNGKey(0)
    kx, kw, kb, kx2, kx3 = jax.random.split(key, 5)

    # Deterministic synthetic Conv1d(2, 1, kernel_size=7) parameters.
    fan_in = 2 * KERNEL_SIZE
    bound = 1.0 / (fan_in ** 0.5)
    weight = jax.random.uniform(kw, (1, 2, KERNEL_SIZE), jnp.float32, -bound, bound)
    bias = jax.random.uniform(kb, (1,), jnp.float32, -bound, bound)

    # Case 1: lane-aligned L, f32.
    B, C, L = 2, 4, 128
    x = jax.random.normal(kx, (B, C, L), dtype=jnp.float32)
    out = jax.block_until_ready(spatial_attention(x, weight, bias))
    ref = spatial_attention_ref(x, weight, bias)
    assert out.shape == (B, C, L)
    assert jnp.allclose(out, ref, atol=1e-5, rtol=1e-5), "mismatch (f32, L=128)"

    # Case 2: non-multiple-of-128 L, odd B (exercises L padding + cdiv grid).
    B2, C2, L2 = 3, 4, 100
    x2 = jax.random.normal(kx2, (B2, C2, L2), dtype=jnp.float32)
    out2 = jax.block_until_ready(spatial_attention(x2, weight, bias))
    ref2 = spatial_attention_ref(x2, weight, bias)
    assert out2.shape == (B2, C2, L2)
    assert jnp.allclose(out2, ref2, atol=1e-5, rtol=1e-5), "mismatch (f32, L=100)"

    # Case 3: bf16 input (f32-accumulated pooling inside the kernel), B=5 also
    # exercises a partial leading-dim block when TB > 1.
    B3, C3, L3 = 5, 4, 256
    x3 = jax.random.normal(kx3, (B3, C3, L3), dtype=jnp.float32).astype(jnp.bfloat16)
    out3 = jax.block_until_ready(spatial_attention(x3, weight, bias))
    ref3 = spatial_attention_ref(x3.astype(jnp.float32), weight, bias)
    assert out3.shape == (B3, C3, L3)
    assert jnp.allclose(out3.astype(jnp.float32), ref3, atol=5e-2, rtol=5e-2), \
        "mismatch (bf16)"

    print("KERNEL_OK")
</pallas_src>

<mosaic_0001>
module attributes {stable_mosaic.version = 11 : i64} {
  func.func @spatial_attention_kernel(%arg0: i32, %arg1: memref<2x7xf32, #tpu.memory_space<smem>>, %arg2: memref<1xf32, #tpu.memory_space<smem>>, %arg3: memref<1x4x128xf32, #tpu.memory_space<vmem>>, %arg4: memref<1x4x128xf32, #tpu.memory_space<vmem>>) attributes {dimension_semantics = [#tpu.dimension_semantics<parallel>], iteration_bounds = array<i64: 2>, scalar_prefetch = 0 : i64, scratch_operands = 0 : i64, tpu.core_type = #tpu.core_type<tc>, window_params = [{transform_indices = @transform_0, window_bounds = array<i64: 2, 7>}, {transform_indices = @transform_1, window_bounds = array<i64: 1>}, {transform_indices = @transform_2, window_bounds = array<i64: 1, 4, 128>}, {transform_indices = @transform_3, window_bounds = array<i64: 1, 4, 128>}]} {
    %c0 = arith.constant 0 : index
    %c0_0 = arith.constant 0 : index
    %c0_1 = arith.constant 0 : index
    %0 = vector.load %arg3[%c0, %c0_0, %c0_1] : memref<1x4x128xf32, #tpu.memory_space<vmem>>, vector<1x4x128xf32>
    %cst = arith.constant dense<0.000000e+00> : vector<1x128xf32>
    %1 = vector.multi_reduction <add>, %0, %cst [1] : vector<1x4x128xf32> to vector<1x128xf32>
    %cst_2 = arith.constant 4.000000e+00 : f32
    %2 = vector.broadcast %cst_2 : f32 to vector<1x128xf32>
    %3 = arith.divf %1, %2 : vector<1x128xf32>
    %cst_3 = arith.constant dense<0xFF800000> : vector<1x128xf32>
    %4 = vector.multi_reduction <maximumf>, %0, %cst_3 [1] : vector<1x4x128xf32> to vector<1x128xf32>
    %5 = tpu.iota {dimensions = array<i32: 1>} : vector<1x128xi32>
    %c0_4 = arith.constant 0 : index
    %6 = memref.load %arg2[%c0_4] : memref<1xf32, #tpu.memory_space<smem>>
    %7 = vector.broadcast %6 : f32 to vector<1x128xf32>
    %c3_i32 = arith.constant 3 : i32
    %8 = tpu.dynamic_rotate %3 by %c3_i32 dim 1 : vector<1x128xf32>, i32 -> vector<1x128xf32>
    %c3_i32_5 = arith.constant 3 : i32
    %9 = tpu.dynamic_rotate %4 by %c3_i32_5 dim 1 : vector<1x128xf32>, i32 -> vector<1x128xf32>
    %c0_6 = arith.constant 0 : index
    %c0_7 = arith.constant 0 : index
    %10 = memref.load %arg1[%c0_6, %c0_7] : memref<2x7xf32, #tpu.memory_space<smem>>
    %11 = vector.broadcast %10 : f32 to vector<1x128xf32>
    %12 = arith.mulf %11, %8 : vector<1x128xf32>
    %c1 = arith.constant 1 : index
    %c0_8 = arith.constant 0 : index
    %13 = memref.load %arg1[%c1, %c0_8] : memref<2x7xf32, #tpu.memory_space<smem>>
    %14 = vector.broadcast %13 : f32 to vector<1x128xf32>
    %15 = arith.mulf %14, %9 : vector<1x128xf32>
    %16 = arith.addf %12, %15 : vector<1x128xf32>
    %c3_i32_9 = arith.constant 3 : i32
    %17 = vector.broadcast %c3_i32_9 : i32 to vector<1x128xi32>
    %18 = arith.cmpi sge, %5, %17 : vector<1x128xi32>
    %cst_10 = arith.constant 0.000000e+00 : f32
    %19 = vector.broadcast %cst_10 : f32 to vector<1x128xf32>
    %20 = arith.select %18, %16, %19 : vector<1x128xi1>, vector<1x128xf32>
    %21 = arith.addf %7, %20 : vector<1x128xf32>
    %c2_i32 = arith.constant 2 : i32
    %22 = tpu.dynamic_rotate %3 by %c2_i32 dim 1 : vector<1x128xf32>, i32 -> vector<1x128xf32>
    %c2_i32_11 = arith.constant 2 : i32
    %23 = tpu.dynamic_rotate %4 by %c2_i32_11 dim 1 : vector<1x128xf32>, i32 -> vector<1x128xf32>
    %c0_12 = arith.constant 0 : index
    %c1_13 = arith.constant 1 : index
    %24 = memref.load %arg1[%c0_12, %c1_13] : memref<2x7xf32, #tpu.memory_space<smem>>
    %25 = vector.broadcast %24 : f32 to vector<1x128xf32>
    %26 = arith.mulf %25, %22 : vector<1x128xf32>
    %c1_14 = arith.constant 1 : index
    %c1_15 = arith.constant 1 : index
    %27 = memref.load %arg1[%c1_14, %c1_15] : memref<2x7xf32, #tpu.memory_space<smem>>
    %28 = vector.broadcast %27 : f32 to vector<1x128xf32>
    %29 = arith.mulf %28, %23 : vector<1x128xf32>
    %30 = arith.addf %26, %29 : vector<1x128xf32>
    %c2_i32_16 = arith.constant 2 : i32
    %31 = vector.broadcast %c2_i32_16 : i32 to vector<1x128xi32>
    %32 = arith.cmpi sge, %5, %31 : vector<1x128xi32>
    %cst_17 = arith.constant 0.000000e+00 : f32
    %33 = vector.broadcast %cst_17 : f32 to vector<1x128xf32>
    %34 = arith.select %32, %30, %33 : vector<1x128xi1>, vector<1x128xf32>
    %35 = arith.addf %21, %34 : vector<1x128xf32>
    %c1_i32 = arith.constant 1 : i32
    %36 = tpu.dynamic_rotate %3 by %c1_i32 dim 1 : vector<1x128xf32>, i32 -> vector<1x128xf32>
    %c1_i32_18 = arith.constant 1 : i32
    %37 = tpu.dynamic_rotate %4 by %c1_i32_18 dim 1 : vector<1x128xf32>, i32 -> vector<1x128xf32>
    %c0_19 = arith.constant 0 : index
    %c2 = arith.constant 2 : index
    %38 = memref.load %arg1[%c0_19, %c2] : memref<2x7xf32, #tpu.memory_space<smem>>
    %39 = vector.broadcast %38 : f32 to vector<1x128xf32>
    %40 = arith.mulf %39, %36 : vector<1x128xf32>
    %c1_20 = arith.constant 1 : index
    %c2_21 = arith.constant 2 : index
    %41 = memref.load %arg1[%c1_20, %c2_21] : memref<2x7xf32, #tpu.memory_space<smem>>
    %42 = vector.broadcast %41 : f32 to vector<1x128xf32>
    %43 = arith.mulf %42, %37 : vector<1x128xf32>
    %44 = arith.addf %40, %43 : vector<1x128xf32>
    %c1_i32_22 = arith.constant 1 : i32
    %45 = vector.broadcast %c1_i32_22 : i32 to vector<1x128xi32>
    %46 = arith.cmpi sge, %5, %45 : vector<1x128xi32>
    %cst_23 = arith.constant 0.000000e+00 : f32
    %47 = vector.broadcast %cst_23 : f32 to vector<1x128xf32>
    %48 = arith.select %46, %44, %47 : vector<1x128xi1>, vector<1x128xf32>
    %49 = arith.addf %35, %48 : vector<1x128xf32>
    %c0_i32 = arith.constant 0 : i32
    %50 = tpu.dynamic_rotate %3 by %c0_i32 dim 1 : vector<1x128xf32>, i32 -> vector<1x128xf32>
    %c0_i32_24 = arith.constant 0 : i32
    %51 = tpu.dynamic_rotate %4 by %c0_i32_24 dim 1 : vector<1x128xf32>, i32 -> vector<1x128xf32>
    %c0_25 = arith.constant 0 : index
    %c3 = arith.constant 3 : index
    %52 = memref.load %arg1[%c0_25, %c3] : memref<2x7xf32, #tpu.memory_space<smem>>
    %53 = vector.broadcast %52 : f32 to vector<1x128xf32>
    %54 = arith.mulf %53, %50 : vector<1x128xf32>
    %c1_26 = arith.constant 1 : index
    %c3_27 = arith.constant 3 : index
    %55 = memref.load %arg1[%c1_26, %c3_27] : memref<2x7xf32, #tpu.memory_space<smem>>
    %56 = vector.broadcast %55 : f32 to vector<1x128xf32>
    %57 = arith.mulf %56, %51 : vector<1x128xf32>
    %58 = arith.addf %54, %57 : vector<1x128xf32>
    %59 = arith.addf %49, %58 : vector<1x128xf32>
    %c127_i32 = arith.constant 127 : i32
    %60 = tpu.dynamic_rotate %3 by %c127_i32 dim 1 : vector<1x128xf32>, i32 -> vector<1x128xf32>
    %c127_i32_28 = arith.constant 127 : i32
    %61 = tpu.dynamic_rotate %4 by %c127_i32_28 dim 1 : vector<1x128xf32>, i32 -> vector<1x128xf32>
    %c0_29 = arith.constant 0 : index
    %c4 = arith.constant 4 : index
    %62 = memref.load %arg1[%c0_29, %c4] : memref<2x7xf32, #tpu.memory_space<smem>>
    %63 = vector.broadcast %62 : f32 to vector<1x128xf32>
    %64 = arith.mulf %63, %60 : vector<1x128xf32>
    %c1_30 = arith.constant 1 : index
    %c4_31 = arith.constant 4 : index
    %65 = memref.load %arg1[%c1_30, %c4_31] : memref<2x7xf32, #tpu.memory_space<smem>>
    %66 = vector.broadcast %65 : f32 to vector<1x128xf32>
    %67 = arith.mulf %66, %61 : vector<1x128xf32>
    %68 = arith.addf %64, %67 : vector<1x128xf32>
    %c127_i32_32 = arith.constant 127 : i32
    %69 = vector.broadcast %c127_i32_32 : i32 to vector<1x128xi32>
    %70 = arith.cmpi slt, %5, %69 : vector<1x128xi32>
    %cst_33 = arith.constant 0.000000e+00 : f32
    %71 = vector.broadcast %cst_33 : f32 to vector<1x128xf32>
    %72 = arith.select %70, %68, %71 : vector<1x128xi1>, vector<1x128xf32>
    %73 = arith.addf %59, %72 : vector<1x128xf32>
    %c126_i32 = arith.constant 126 : i32
    %74 = tpu.dynamic_rotate %3 by %c126_i32 dim 1 : vector<1x128xf32>, i32 -> vector<1x128xf32>
    %c126_i32_34 = arith.constant 126 : i32
    %75 = tpu.dynamic_rotate %4 by %c126_i32_34 dim 1 : vector<1x128xf32>, i32 -> vector<1x128xf32>
    %c0_35 = arith.constant 0 : index
    %c5 = arith.constant 5 : index
    %76 = memref.load %arg1[%c0_35, %c5] : memref<2x7xf32, #tpu.memory_space<smem>>
    %77 = vector.broadcast %76 : f32 to vector<1x128xf32>
    %78 = arith.mulf %77, %74 : vector<1x128xf32>
    %c1_36 = arith.constant 1 : index
    %c5_37 = arith.constant 5 : index
    %79 = memref.load %arg1[%c1_36, %c5_37] : memref<2x7xf32, #tpu.memory_space<smem>>
    %80 = vector.broadcast %79 : f32 to vector<1x128xf32>
    %81 = arith.mulf %80, %75 : vector<1x128xf32>
    %82 = arith.addf %78, %81 : vector<1x128xf32>
    %c126_i32_38 = arith.constant 126 : i32
    %83 = vector.broadcast %c126_i32_38 : i32 to vector<1x128xi32>
    %84 = arith.cmpi slt, %5, %83 : vector<1x128xi32>
    %cst_39 = arith.constant 0.000000e+00 : f32
    %85 = vector.broadcast %cst_39 : f32 to vector<1x128xf32>
    %86 = arith.select %84, %82, %85 : vector<1x128xi1>, vector<1x128xf32>
    %87 = arith.addf %73, %86 : vector<1x128xf32>
    %c125_i32 = arith.constant 125 : i32
    %88 = tpu.dynamic_rotate %3 by %c125_i32 dim 1 : vector<1x128xf32>, i32 -> vector<1x128xf32>
    %c125_i32_40 = arith.constant 125 : i32
    %89 = tpu.dynamic_rotate %4 by %c125_i32_40 dim 1 : vector<1x128xf32>, i32 -> vector<1x128xf32>
    %c0_41 = arith.constant 0 : index
    %c6 = arith.constant 6 : index
    %90 = memref.load %arg1[%c0_41, %c6] : memref<2x7xf32, #tpu.memory_space<smem>>
    %91 = vector.broadcast %90 : f32 to vector<1x128xf32>
    %92 = arith.mulf %91, %88 : vector<1x128xf32>
    %c1_42 = arith.constant 1 : index
    %c6_43 = arith.constant 6 : index
    %93 = memref.load %arg1[%c1_42, %c6_43] : memref<2x7xf32, #tpu.memory_space<smem>>
    %94 = vector.broadcast %93 : f32 to vector<1x128xf32>
    %95 = arith.mulf %94, %89 : vector<1x128xf32>
    %96 = arith.addf %92, %95 : vector<1x128xf32>
    %c125_i32_44 = arith.constant 125 : i32
    %97 = vector.broadcast %c125_i32_44 : i32 to vector<1x128xi32>
    %98 = arith.cmpi slt, %5, %97 : vector<1x128xi32>
    %cst_45 = arith.constant 0.000000e+00 : f32
    %99 = vector.broadcast %cst_45 : f32 to vector<1x128xf32>
    %100 = arith.select %98, %96, %99 : vector<1x128xi1>, vector<1x128xf32>
    %101 = arith.addf %87, %100 : vector<1x128xf32>
    %102 = arith.negf %101 : vector<1x128xf32>
    %103 = math.exp %102 : vector<1x128xf32>
    %cst_46 = arith.constant 1.000000e+00 : f32
    %104 = vector.broadcast %cst_46 : f32 to vector<1x128xf32>
    %105 = arith.addf %104, %103 : vector<1x128xf32>
    %106 = arith.divf %104, %105 : vector<1x128xf32>
    %c0_47 = arith.constant 0 : index
    %c0_48 = arith.constant 0 : index
    %c0_49 = arith.constant 0 : index
    %107 = vector.load %arg3[%c0_47, %c0_48, %c0_49] : memref<1x4x128xf32, #tpu.memory_space<vmem>>, vector<1x4x128xf32>
    %108 = vector.shape_cast %106 : vector<1x128xf32> to vector<1x1x128xf32>
    %109 = vector.broadcast %108 : vector<1x1x128xf32> to vector<1x4x128xf32>
    %110 = arith.mulf %107, %109 : vector<1x4x128xf32>
    %c0_50 = arith.constant 0 : index
    %c0_51 = arith.constant 0 : index
    %c0_52 = arith.constant 0 : index
    %111 = vector.load %arg4[%c0_50, %c0_51, %c0_52] : memref<1x4x128xf32, #tpu.memory_space<vmem>>, vector<1x4x128xf32>
    tpu.vector_store %arg4[%c0_50, %c0_51, %c0_52], %110 {strides = array<i32>} : memref<1x4x128xf32, #tpu.memory_space<vmem>>, vector<1x4x128xf32>,
    return
  }
  func.func @transform_0(%arg0: i32) -> (i32, i32) {
    %c0_i32 = arith.constant 0 : i32
    %c0_i32_0 = arith.constant 0 : i32
    %c0_i32_1 = arith.constant 0 : i32
    return %c0_i32, %c0_i32_0 : i32, i32
  }
  func.func @transform_1(%arg0: i32) -> i32 {
    %c0_i32 = arith.constant 0 : i32
    %c0_i32_0 = arith.constant 0 : i32
    return %c0_i32 : i32
  }
  func.func @transform_2(%arg0: i32) -> (i32, i32, i32) {
    %c0_i32 = arith.constant 0 : i32
    %c0_i32_0 = arith.constant 0 : i32
    %c0_i32_1 = arith.constant 0 : i32
    return %arg0, %c0_i32, %c0_i32_0 : i32, i32, i32
  }
  func.func @transform_3(%arg0: i32) -> (i32, i32, i32) {
    %c0_i32 = arith.constant 0 : i32
    %c0_i32_0 = arith.constant 0 : i32
    %c0_i32_1 = arith.constant 0 : i32
    return %arg0, %c0_i32, %c0_i32_0 : i32, i32, i32
  }
}

</mosaic_0001>

<bundles_post_ra>
// kernel: tpu_custom_call.1
= control target key start
LH: loop header
LB: loop body
LE: loop exit
PB: predicated region body
PF: predicated region fallthrough
CT: control target
= control target key end

     0   :  { %s902_s0 = inlined_call_operand.vmem [shape: f32[2,7], index: 0, kind: input, shape index: {}]   ;;  %s903_s1 = inlined_call_operand.<no memory space> [shape: f32[1], index: 1, kind: input, shape index: {}]   ;;  %s904_s2 = inlined_call_operand.hbm [shape: f32[2,4,128], index: 2, kind: input, shape index: {}]   ;;  %s905_s3 = inlined_call_operand.hbm [shape: f32[2,4,128], index: 3, kind: output, shape index: {}]  }
   0x1   :  { %8 = sst [smem:[#allocation2]] %s903_s1 }
   0x2   :  { %9 = vsyncpa [#allocation6], 0 }
   0x3   :  { %10 = vsyncpa [#allocation4], 0 }
   0x4   :  { %12 = vsyncpa [#allocation4 + $0x1], 0 }
   0x5   :  { %13 = vsyncpa [#allocation5], 0 }
   0x6   :  { %15 = vsyncpa [#allocation5 + $0x1], 0  ;;  %s667_s14 = smov 0   ;;  %s669_s15 = smov 0  }
   0x7   :  { %s671_s16 = smov 0   ;;  %s673_s17 = smov 0  }
   0x8 LB: > { %s688_s1 = sadd.s32 4294967295, %s633_s17   ;;  %s423_s18 = sadd.s32 4294967294, %s633_s17   ;;  %s633_s17 = sphi %s673_s17, %s926_s17   ;;  %s629_s16 = sphi %s671_s16, %s925_s16   ;;  %s625_s15 = sphi %s669_s15, %s924_s15   ;;  %s621_s14 = sphi %s667_s14, %s923_s14  }
   0x9   : > { %p83_p0 = scmp.ne.s32.totalorder %s625_s15, %s621_s14  ;;  %p906_p1 = scmp.eq.s32.totalorder %s688_s1, 0 }
   0xa   : > { %p113_p3 = scmp.eq.s32.totalorder %s423_s18, 1  ;;  %p424_p5 = scmp.ge.s32.totalorder %s633_s17, 1 }
   0xb   : > { %p697_p4 = por %p906_p1, %p83_p0  ;;  %p120_p7 = scmp.lt.s32.totalorder %s633_s17, 3 }
   0xc   : > { %p702_p6 = por %p113_p3, %p83_p0  ;;  %s133_s23 = sshll.u32 %s902_s0, 4  ;;  %s134_s23 = int_to_ptr.vmem [resolvable:$true] %s133_s23 }
   0xd   : > { %s909_s19 = scalar_select %p697_p4, 1, 0 }
   0xe   : > { %s910_s20 = scalar_select %p702_p6, 1, 0 }
   0xf   : > { %p710_p8 = pnand %p424_p5, %p120_p7  ;;  %s718_s25 = sadd.s32 1, %s633_s17  }
  0x10   : > { %s67_s27 = ssub.s32 %s633_s17, %s718_s25  ;;  %s70_s29 = sadd.s32 1, %s629_s16 }
  0x11   : > { %p459_p10 = pneg %p710_p8  ;;  %p728_p12 = scmp.eq.s32.totalorder %s67_s27, 0 }
  0x12   : > { %p77_p13 = scmp.ne.s32.totalorder %s629_s16, %s625_s15  ;;  %s518_s30 = scalar_lea.vmem %s134_s23, 32 }
  0x13   : > { %p722_p11 = pnand %p459_p10, %p906_p1  ;;  %p519_p0 = scmp.ne.s32.totalorder %s134_s23, %s518_s30 }
  0x14   : > { %p526_p9 = scmp.lt.s32.totalorder %s134_s23, %s134_s23  ;;  %p527_p2 = scmp.lt.s32.totalorder %s518_s30, %s518_s30 }
  0x15   : > { %p520_p3 = pneg %p722_p11 }
  0x16   : > { %p528_p10 = por %p527_p2, %p526_p9 }
  0x17   : > { %p521_p5 = pnand %p520_p3, %p519_p0 }
  0x19   : > { %p522_p7 = pneg %p521_p5 }
  0x1b   : > { %p529_p1 = pnand %p528_p10, %p522_p7 }
  0x1d   : > { %532 = shalt.err (!%p529_p1)
}
  0x1e   : > { %s635_s4 = smov [#allocation3]   ;;  %p78_p2 = scmp.eq.s32.totalorder %s633_s17, 0 }
  0x1f   : > { %462 = dma.vmem_to_smem (!%p722_p11), %s134_s23, 32, %s635_s4, [#allocation6]  }
  0x20   : > { %s742_s5 = scalar_select %p728_p12, %s629_s16, %s70_s29  }
  0x21   : > { %p914_p1 = scmp.eq.s32.totalorder %s688_s1, 1  ;;  %p472_p0 = scmp.lt.s32.totalorder %s633_s17, 2 }
  0x22   : > { %s147_s7 = sand.u32 1, %s629_s16   ;;  %p79_p3 = por %p78_p2, %p77_p13 }
  0x23   : > { %p750_p9 = por %p914_p1, %p77_p13  ;;  %s427_s8 = sshll.u32 %s147_s7, 2 }
  0x24   : > { %s428_s9 = sshll.u32 %s633_s17, 6  ;;  %s151_s13 = scalar_lea.vmem [#allocation7], %s427_s8 }
  0x25   : > { %s915_s6 = scalar_select %p750_p9, 1, 0 }
  0x26   : > { %s763_s12 = scalar_lea.hbm %s904_s2, %s428_s9  ;;  %s158_s18 = sshll.u32 %s151_s13, 4  ;;  %s769_s18 = int_to_ptr.vmem [resolvable:$true] %s158_s18 }
  0x27   : > { %p765_p11 = pnand %p472_p0, %p79_p3  ;;  %s148_s22 = scalar_lea.sflag [#allocation4], %s147_s7 }
  0x28   : > { %s533_s23 = scalar_lea.hbm %s763_s12, 64  ;;  %s538_s28 = scalar_lea.hbm %s904_s2, 128 }
  0x29   : > { %p534_p12 = scmp.ne.s32.totalorder %s763_s12, %s533_s23  ;;  %p535_p13 = pneg %p765_p11 }
  0x2a   : > { %p539_p10 = scmp.lt.u32.totalorder %s763_s12, %s904_s2  ;;  %p540_p2 = scmp.lt.u32.totalorder %s538_s28, %s533_s23 }
  0x2b   : > { %p536_p5 = pnand %p535_p13, %p534_p12  ;;  %p542_p0 = scmp.lt.u32.totalorder %s533_s23, %s763_s12 }
  0x2c   : > { %p541_p1 = por %p540_p2, %p539_p10 }
  0x2d   : > { %p537_p7 = pneg %p536_p5 }
  0x2e   : > { %p543_p3 = por %p542_p0, %p541_p1 }
  0x30   : > { %p544_p6 = pnand %p543_p3, %p537_p7 }
  0x32   : > { %547 = shalt.err (!%p544_p6)
}
  0x33   : > { %s548_s4 = scalar_lea.vmem %s769_s18, 64  ;;  %s636_s7 = smov [#allocation7]  }
  0x34   : > { %p549_p12 = scmp.ne.s32.totalorder %s769_s18, %s548_s4  ;;  %s553_s8 = sshll.u32 %s636_s7, 4  ;;  %s554_s8 = int_to_ptr.vmem [resolvable:$false] %s553_s8 }
  0x35   : > { %s555_s9 = scalar_lea.vmem %s554_s8, 128  ;;  %p556_p4 = scmp.lt.s32.totalorder %s769_s18, %s554_s8 }
  0x36   : > { %p551_p5 = pnand %p549_p12, %p535_p13  ;;  %p557_p10 = scmp.lt.s32.totalorder %s555_s9, %s548_s4 }
  0x38   : > { %p552_p9 = pneg %p551_p5  ;;  %p558_p2 = por %p557_p10, %p556_p4 }
  0x3a   : > { %p559_p1 = pnand %p558_p2, %p552_p9 }
  0x3c   : > { %562 = shalt.err (!%p559_p1)
}
  0x3d   : > { %466 = dma.hbm_to_vmem [thread:$0]  (!%p765_p11), %s763_s12, 64, %s769_s18, %s148_s22  }
  0x3e   : > { %167 = sbr.rel (%p710_p8) target bundleno = 276 (0x114), region = 32  ;;  %p917_p6 = scmp.eq.s32.totalorder (!%p710_p8), %s688_s1, 0 }
  0x45   : > { %608 = dma.done.wait (%p917_p6), [#allocation6], 32   ;;  %p918_p13 = pmov %p917_p6 }
  0x46   : > { %s803_s10 = sand.u32 1, %s625_s15   ;;  %p919_p4 = scmp.ne.s32.totalorder %s909_s19, 0 }
  0x47   : > { %610 = vsyncadd (%p918_p13), [#allocation6], 4294967264  ;;  %s431_s11 = sshll.u32 %s803_s10, 2  ;;  %s174_s13 = scalar_lea.sflag [#allocation4], %s803_s10 }
  0x48   : > { %s177_s12 = scalar_lea.vmem [#allocation7], %s431_s11 }
  0x49   : > { %612 = dma.done.wait (%p919_p4), %s174_s13, 64  }
  0x4a   : > { %614 = vsyncadd (%p919_p4), %s174_s13, 4294967232 }
  0x4b   : > { %182 = sfence }
  0x4c   : > { %v813_v0 = vld [vmem:[%s177_s12] sm:$0xf]  ;;  %vm202_vm0 = vcmask 1043456   ;;  %s438_s24 = sld [smem:[#allocation3 + $0x3]]  ;;  %s637_s19 = smov 2   ;;  %v219_v21 = vlaneseq }
  0x4d   : > { %v212_v1 = vsel %vm202_vm0, %v813_v0, -inf  ;;  %v203_v2 = vsel %vm202_vm0, %v813_v0, 0.0  ;;  %s439_s18 = sld [smem:[#allocation3 + $0x83]]  ;;  %s638_s21 = smov 3  }
  0x4e   : > { %v213_v3 = vrot.slane %v212_v1, 4  ;;  %v204_v4 = vrot.slane %v203_v2, 4  ;;  %s639_s22 = smov 1   ;;  %s640_s23 = smov 127   ;;  %v822_v25 = vand.u32 127, %v219_v21 }
  0x4f   : > { %s641_s26 = smov 126   ;;  %s642_s27 = smov 125  }
  0x50   : > { %v214_v5 = vmax.f32 %v212_v1, %v213_v3  ;;  %v205_v6 = vadd.f32 %v204_v4, %v203_v2  ;;  %s433_s28 = sld [smem:[#allocation3 + $0x80]]  ;;  %s435_s30 = sld [smem:[#allocation3 + $0x81]]  ;;  %vm234_vm1 = vcmp.ge.s32.totalorder %v822_v25, 3  ;;  %vm248_vm2 = vcmp.ge.s32.totalorder %v822_v25, 2 }
  0x51   : > { %s227_s29 = sld [smem:[#allocation3]]  ;;  %s437_s4 = sld [smem:[#allocation3 + $0x82]]  ;;  %vm262_vm3 = vcmp.ge.s32.totalorder %v822_v25, 1  ;;  %vm284_vm4 = vcmp.lt.s32.totalorder %v822_v25, 127  ;;  %vm298_vm5 = vcmp.lt.s32.totalorder %v822_v25, 126  ;;  %vm312_vm6 = vcmp.lt.s32.totalorder %v822_v25, 125 }
  0x52   : > { %v215_v7 = vrot.slane %v214_v5, 2  ;;  %v206_v8 = vrot.slane %v205_v6, 2  ;;  %v266_v15 = vstv %s438_s24  ;;  %s434_s7 = sld [smem:[#allocation3 + $0x1]]  ;;  %s436_s8 = sld [smem:[#allocation3 + $0x2]] }
  0x53   : > { %v269_v17 = vstv %s439_s18  ;;  %s819_s9 = sld [smem:[#allocation2]]  ;;  %s824_s13 = sld [smem:[#allocation3 + $0x84]] }
  0x54   : > { %v216_v9 = vmax.f32 %v214_v5, %v215_v7  ;;  %v207_v10 = vadd.f32 %v206_v8, %v205_v6  ;;  %s826_s12 = sld [smem:[#allocation3 + $0x4]]  ;;  %s829_s24 = sld [smem:[#allocation3 + $0x85]] }
  0x55   : > { %s831_s18 = sld [smem:[#allocation3 + $0x5]]  ;;  %p920_p9 = scmp.ne.s32.totalorder %s915_s6, 0 }
  0x56   : > { %v217_v11 = vrot.slane %v216_v9, 1  ;;  %v208_v12 = vrot.slane %v207_v10, 1  ;;  %v231_v24 = vstv %s433_s28  ;;  %v245_v29 = vstv %s435_s30  ;;  %s328_s30 = scalar_lea.sflag [#allocation5], %s803_s10 }
  0x57   : > { %v228_v26 = vstv %s227_s29  ;;  %v259_v32 = vstv %s437_s4 }
  0x58   : > { %v218_v13 = vmax.f32 %v216_v9, %v217_v11  ;;  %v209_v14 = vadd.f32 %v208_v12, %v207_v10  ;;  %v242_v33 = vstv %s434_s7  ;;  %v256_v34 = vstv %s436_s8 }
  0x59   : > { %v222_v37 = vstv %s819_s9  ;;  %v281_v44 = vstv %s824_s13 }
  0x5a   : > { %239 = vrot.lane.b32.xlu1 %v218_v13, %s637_s19  ;;  %225 = vrot.lane.b32.xlu0 %v218_v13, %s638_s21  ;;  %v211_v16 = vmul.f32 0.25, %v209_v14  ;;  %v270_v18 = vmul.f32 %v269_v17, %v218_v13  ;;  %v278_v45 = vstv %s826_s12  ;;  %v295_v55 = vstv %s829_s24 }
  0x5b   : > { %v292_v56 = vstv %s831_s18 }
  0x5c   : > { %v267_v19 = vmul.f32 %v266_v15, %v211_v16 }
  0x5e   : > { %253 = vrot.lane.b32.xlu1 %v218_v13, %s639_s22  ;;  %223 = vrot.lane.b32.xlu0 %v211_v16, %s638_s21  ;;  %v817_v20 = vadd.f32 %v270_v18, %v267_v19  ;;  %s839_s21 = sld [smem:[#allocation3 + $0x6]]  ;;  %v322_v19 = vshrl.u32 %v219_v21, 7 }
  0x62   : > { %237 = vrot.lane.b32.xlu1 %v211_v16, %s637_s19  ;;  %251 = vrot.lane.b32.xlu0 %v211_v16, %s639_s22  ;;  %s837_s19 = sld [smem:[#allocation3 + $0x86]]  ;;  %s448_s22 = sshll.u32 %s688_s1, 6 }
  0x63   : > { %s858_s29 = scalar_lea.hbm %s905_s3, %s448_s22  ;;  %s643_s1 = smov [#allocation8]  }
  0x64   : > { %v306_v3 = vstv %s839_s21 }
  0x66   : > { %275 = vrot.lane.b32.xlu1 %v218_v13, %s640_s23  ;;  %273 = vrot.lane.b32.xlu0 %v211_v16, %s640_s23  ;;  %s200_s23 = scalar_lea.vmem [#allocation8], %s431_s11  ;;  %s567_s11 = sshll.u32 %s643_s1, 4  ;;  %s568_s11 = int_to_ptr.vmem [resolvable:$false] %s567_s11 }
  0x67   : > { %s569_s7 = scalar_lea.vmem %s568_s11, 128 }
  0x68   : > { %v309_v2 = vstv %s837_s19 }
  0x6a   : > { %289 = vrot.lane.b32.xlu1 %v218_v13, %s641_s26  ;;  %287 = vrot.lane.b32.xlu0 %v211_v16, %s641_s26  ;;  %s341_s26 = sshll.u32 %s200_s23, 4  ;;  %s860_s26 = int_to_ptr.vmem [resolvable:$true] %s341_s26 }
  0x6b   : > { %s563_s4 = scalar_lea.vmem %s860_s26, 64  ;;  %p570_p0 = scmp.lt.s32.totalorder %s860_s26, %s568_s11 }
  0x6c   : > { %p564_p8 = scmp.ne.s32.totalorder %s860_s26, %s563_s4  ;;  %p571_p3 = scmp.lt.s32.totalorder %s569_s7, %s563_s4 }
  0x6e   : > { %303 = vrot.lane.b32.xlu1 %v218_v13, %s642_s27  ;;  %301 = vrot.lane.b32.xlu0 %v211_v16, %s642_s27  ;;  %p565_p11 = pnand %p564_p8, %p920_p9  ;;  %p572_p12 = por %p571_p3, %p570_p0 }
  0x70   : > { %p566_p7 = pneg %p565_p11 }
  0x72   : > { %p573_p5 = pnand %p572_p12, %p566_p7 }
  0xcc   : > { %v240_v22 = vpop.permute.xlu1 %239  ;;  %v226_v23 = vpop.permute.xlu0 %225 }
  0xcd   : > { %v232_v30 = vmul.f32 %v231_v24, %v226_v23  ;;  %v246_v36 = vmul.f32 %v245_v29, %v240_v22 }
  0xd0   : > { %v254_v27 = vpop.permute.xlu1 %253  ;;  %v224_v28 = vpop.permute.xlu0 %223 }
  0xd1   : > { %v229_v31 = vmul.f32 %v228_v26, %v224_v28  ;;  %v260_v40 = vmul.f32 %v259_v32, %v254_v27 }
  0xd3   : > { %v233_v35 = vadd.f32 %v232_v30, %v229_v31 }
  0xd4   : > { %v238_v38 = vpop.permute.xlu1 %237  ;;  %v252_v39 = vpop.permute.xlu0 %251 }
  0xd5   : > { %v235_v41 = vsel %vm234_vm1, %v233_v35, 0.0  ;;  %v243_v42 = vmul.f32 %v242_v33, %v238_v38  ;;  %v257_v43 = vmul.f32 %v256_v34, %v252_v39 }
  0xd6   : > { %v236_v48 = vadd.f32 %v235_v41, %v222_v37 }
  0xd7   : > { %v247_v46 = vadd.f32 %v246_v36, %v243_v42  ;;  %v261_v47 = vadd.f32 %v260_v40, %v257_v43 }
  0xd8   : > { %v276_v49 = vpop.permute.xlu1 %275  ;;  %v274_v50 = vpop.permute.xlu0 %273 }
  0xd9   : > { %v249_v51 = vsel %vm248_vm2, %v247_v46, 0.0  ;;  %v282_v52 = vmul.f32 %v281_v44, %v276_v49  ;;  %v279_v53 = vmul.f32 %v278_v45, %v274_v50  ;;  %v263_v57 = vsel %vm262_vm3, %v261_v47, 0.0 }
  0xda   : > { %v250_v54 = vadd.f32 %v249_v51, %v236_v48 }
  0xdb   : > { %v283_v58 = vadd.f32 %v282_v52, %v279_v53 }
  0xdc   : > { %v264_v59 = vadd.f32 %v263_v57, %v250_v54  ;;  %v290_v60 = vpop.permute.xlu1 %289  ;;  %v288_v61 = vpop.permute.xlu0 %287 }
  0xdd   : > { %v296_v62 = vmul.f32 %v295_v55, %v290_v60  ;;  %v293_v63 = vmul.f32 %v292_v56, %v288_v61  ;;  %v285_v4 = vsel %vm284_vm4, %v283_v58, 0.0 }
  0xde   : > { %v272_v1 = vadd.f32 %v817_v20, %v264_v59  ;;  %v323_v20 = vsub.s32 0, %v322_v19 }
  0xdf   : > { %v297_v5 = vadd.f32 %v296_v62, %v293_v63 }
  0xe0   : > { %v286_v6 = vadd.f32 %v285_v4, %v272_v1  ;;  %v304_v7 = vpop.permute.xlu1 %303  ;;  %v302_v8 = vpop.permute.xlu0 %301 }
  0xe1   : > { %v299_v9 = vsel %vm298_vm5, %v297_v5, 0.0  ;;  %v310_v10 = vmul.f32 %v309_v2, %v304_v7  ;;  %v307_v11 = vmul.f32 %v306_v3, %v302_v8 }
  0xe2   : > { %v300_v13 = vadd.f32 %v299_v9, %v286_v6 }
  0xe3   : > { %v311_v12 = vadd.f32 %v310_v10, %v307_v11 }
  0xe5   : > { %v313_v14 = vsel %vm312_vm6, %v311_v12, 0.0 }
  0xe6   : > { %v314_v15 = vadd.f32 %v313_v14, %v300_v13 }
  0xe8   : > { %v446_v16 = vmul.f32 -1.442695, %v314_v15 }
  0xea   : > { %514 = vpow2.f32 %v446_v16 }
  0xf4   : > { %v515_v17 = vpop.eup %514 }
  0xf5   : > { %v318_v18 = vadd.f32 1.0, %v515_v17 }
  0xf7   : > { %516 = vrcp.f32 %v318_v18 }
 0x101   : > { %v517_v22 = vpop.eup %516 }
 0x102   : > { %v324_v23 = vrot.slane %v517_v22, %v323_v20 }
 0x104   : > { %v325_v24 = vmul.f32 %v324_v23, %v813_v0 }
 0x106   : > { %326 = vst [vmem:[%s200_s23] sm:$0xf] %v325_v24 }
 0x107   : > { %576 = shalt.err (!%p573_p5)
}
 0x108   : > { %s577_s10 = scalar_lea.hbm %s858_s29, 64  ;;  %s581_s13 = scalar_lea.hbm %s905_s3, 128 }
 0x109   : > { %p578_p10 = scmp.ne.s32.totalorder %s858_s29, %s577_s10  ;;  %p582_p6 = scmp.lt.u32.totalorder %s858_s29, %s905_s3 }
 0x10a   : > { %p583_p13 = scmp.lt.u32.totalorder %s581_s13, %s577_s10  ;;  %p585_p8 = scmp.lt.u32.totalorder %s577_s10, %s858_s29 }
 0x10b   : > { %p579_p2 = pnand %p578_p10, %p920_p9 }
 0x10c   : > { %p584_p4 = por %p583_p13, %p582_p6 }
 0x10d   : > { %p580_p1 = pneg %p579_p2 }
 0x10e   : > { %p586_p11 = por %p585_p8, %p584_p4 }
 0x110   : > { %p587_p7 = pnand %p586_p11, %p580_p1 }
 0x112   : > { %590 = shalt.err (!%p587_p7)
}
 0x113   : > { %457 = dma.vmem_to_hbm [thread:$0]  (%p920_p9), %s860_s26, 64, %s858_s29, %s328_s30  }
 0x114 PF: > { %s353_s18 = sand.u32 1, %s621_s14   ;;  %p921_p0 = scmp.ne.s32.totalorder %s910_s20, 0 }
 0x115   : > { %p922_p3 = scmp.ge.s32.totalorder %s633_s17, 2  ;;  %s354_s19 = scalar_lea.sflag [#allocation5], %s353_s18 }
 0x117   : > { %p468_p12 = pnand %p922_p3, %p921_p0 }
 0x119   : > { %616 = dma.done.wait (!%p468_p12), %s354_s19, 64  }
 0x11a   : > { %618 = vsyncadd (!%p468_p12), %s354_s19, 4294967232  ;;  %p18_p5 = scmp.ge.s32.totalorder %s718_s25, 4   ;;  %s923_s14 = smov %s625_s15 }
 0x11b   : > { %s924_s15 = smov %s629_s16  ;;  %s925_s16 = smov %s742_s5 }
 0x11c   : > { %s926_s17 = smov %s718_s25  ;;  %20 = sbr.rel (!%p18_p5) target bundleno = 8 (0x8), region = 82 }
 0x123   :  { %359 = vsyncpa [#allocation4], 1 }
 0x124   :  { %361 = vsyncpa [#allocation4 + $0x1], 1 }
 0x125   :  { %362 = vsyncpa [#allocation5], 1 }
 0x126   :  { %364 = vsyncpa [#allocation5 + $0x1], 1 }
 0x127   :  { %365 = vsyncpa [#allocation6], 1 }
 0x128   :  { %367 = vsyncpa [#allocation6 + $0x1], 1 }

</bundles_post_ra>
